<compile_context>
chip_gen: v7x
topology: tpu7x:2x2x1
jax: 0.10.0
libtpu: 0.0.40
codegen_flags: <defaults>
</compile_context>

<pallas_src>
import math

import jax
import jax.numpy as jnp
from jax import lax
from jax.experimental import pallas as pl
from jax.experimental.pallas import tpu as pltpu

_LANES = 128      # vreg lane width
_SUBLANES = 16    # sublane multiple legal for both f32 (8,128) and bf16 (16,128)


def _cdiv(a, b):
    return -(-a // b)


def _round_up(v, m):
    return _cdiv(v, m) * m


def _vmem_capacity_bytes():
    """Physical VMEM of the current chip; conservative fallback (v7x) if unknown."""
    try:
        info = pltpu.get_tpu_info()
        cap = getattr(info, "vmem_capacity_bytes", None)
        if cap:
            return int(cap)
    except Exception:
        pass
    return 64 * 1024 * 1024


def _pick_tile(full, target, quantum):
    """Largest divisor of `full` that is a multiple of `quantum` and <= target,
    or `full` itself (no tiling) when the axis is small / not cleanly divisible."""
    if full <= target or full % quantum != 0:
        return full
    t = (target // quantum) * quantum
    while t >= quantum:
        if full % t == 0:
            return t
        t -= quantum
    return full


def _make_kernel(has_bias: bool, k_tiled: bool):
    """Kernel factory. Refs: x (1,tm,tk), w (1,tn,tk) [PyTorch layout],
    optional bias (1,1,tn), out (1,tm,tn), optional f32 acc scratch (tm,tn)."""

    def _dot(x_ref, w_ref):
        # x @ W.T : contract the last (in_feat) dim of both operands on the MXU.
        return lax.dot_general(
            x_ref[0], w_ref[0],
            dimension_numbers=(((1,), (1,)), ((), ())),
            preferred_element_type=jnp.float32)

    if k_tiled:
        if has_bias:
            def kernel(x_ref, w_ref, b_ref, o_ref, acc_ref):
                k = pl.program_id(3)

                @pl.when(k == 0)
                def _init():
                    acc_ref[...] = jnp.zeros_like(acc_ref)

                acc_ref[...] += _dot(x_ref, w_ref)

                @pl.when(k == pl.num_programs(3) - 1)
                def _fin():
                    o_ref[0] = (acc_ref[...] + b_ref[0]).astype(o_ref.dtype)
        else:
            def kernel(x_ref, w_ref, o_ref, acc_ref):
                k = pl.program_id(3)

                @pl.when(k == 0)
                def _init():
                    acc_ref[...] = jnp.zeros_like(acc_ref)

                acc_ref[...] += _dot(x_ref, w_ref)

                @pl.when(k == pl.num_programs(3) - 1)
                def _fin():
                    o_ref[0] = acc_ref[...].astype(o_ref.dtype)
    else:
        if has_bias:
            def kernel(x_ref, w_ref, b_ref, o_ref):
                o_ref[0] = (_dot(x_ref, w_ref) + b_ref[0]).astype(o_ref.dtype)
        else:
            def kernel(x_ref, w_ref, o_ref):
                o_ref[0] = _dot(x_ref, w_ref).astype(o_ref.dtype)

    return kernel


def batch_separated_linear(x, weight, bias=None, *,
                           tile_m=None, tile_n=None, tile_k=None):
    """Pallas forward of BatchSeparatedLinear.

    x: [B, d1, ..., dk, in_feat], weight: [B, out_feat, in_feat],
    bias: [B, out_feat] or None.  Returns [B, d1, ..., dk, out_feat] (x.dtype).
    """
    B = x.shape[0]
    in_feat = x.shape[-1]
    middle = x.shape[1:-1]
    out_feat = weight.shape[1]
    assert weight.shape == (B, out_feat, in_feat), "weight must be [B, out, in]"

    M = 1
    for d in middle:
        M *= int(d)
    x2 = x.reshape(B, M, in_feat)
    w = weight.astype(x.dtype)            # no transpose / no pad: used as [B, out, in]
    has_bias = bias is not None
    if has_bias:
        b2 = bias.astype(jnp.float32).reshape(B, 1, out_feat)

    x_bytes = jnp.dtype(x.dtype).itemsize

    # ---- N / K tile selection (tile only when evenly divisible by 128) -------
    if tile_k is None:
        tile_k = _pick_tile(in_feat, 512, _LANES)
    if tile_n is None:
        tile_n = _pick_tile(out_feat, 256, _LANES)
    tile_k, tile_n = int(tile_k), int(tile_n)
    assert tile_k == in_feat or (in_feat % tile_k == 0 and tile_k % _LANES == 0)
    assert tile_n == out_feat or (out_feat % tile_n == 0 and tile_n % _LANES == 0)
    grid_k = in_feat // tile_k
    grid_n = out_feat // tile_n
    k_tiled = grid_k > 1

    # ---- VMEM budget / M tile (per-generation) --------------------------------
    vmem_cap = _vmem_capacity_bytes()
    vmem_limit = int(min(vmem_cap * 3 // 4, 100 * 1024 * 1024))
    if tile_m is None:
        budget = vmem_limit // 2                                # headroom for Mosaic scratch
        fixed = 2 * tile_n * tile_k * x_bytes + 2 * tile_n * 4  # weight + bias double buffers
        per_row = 2 * tile_k * x_bytes + 2 * tile_n * x_bytes + tile_n * 4
        tile_m = max(budget - fixed, per_row * _SUBLANES) // per_row
        tile_m = max(_SUBLANES, (tile_m // _SUBLANES) * _SUBLANES)
        tile_m = min(tile_m, 1024)
    tile_m = int(tile_m)
    tile_m = min(_round_up(max(tile_m, 1), _SUBLANES), _round_up(max(M, 1), _SUBLANES))
    grid_m = _cdiv(M, tile_m)

    # Megacore: keep >= 2 parallel chunks when the problem allows it.
    if B * grid_m * grid_n < 2 and M > 2 * _SUBLANES:
        tile_m = _round_up(_cdiv(M, 2), _SUBLANES)
        grid_m = _cdiv(M, tile_m)

    # ---- Block specs ----------------------------------------------------------
    x_spec = pl.BlockSpec((1, tile_m, tile_k), lambda b, i, j, k: (b, i, k))
    w_spec = pl.BlockSpec((1, tile_n, tile_k), lambda b, i, j, k: (b, j, k))
    o_spec = pl.BlockSpec((1, tile_m, tile_n), lambda b, i, j, k: (b, i, j))

    in_specs = [x_spec, w_spec]
    inputs = [x2, w]
    if has_bias:
        in_specs.append(pl.BlockSpec((1, 1, tile_n), lambda b, i, j, k: (b, 0, j)))
        inputs.append(b2)

    scratch = [pltpu.VMEM((tile_m, tile_n), jnp.float32)] if k_tiled else []

    grid_spec = pltpu.PrefetchScalarGridSpec(
        num_scalar_prefetch=0,
        grid=(B, grid_m, grid_n, grid_k),
        in_specs=in_specs,
        out_specs=o_spec,
        scratch_shapes=scratch,
    )

    flops = 2 * B * M * in_feat * out_feat
    bytes_accessed = (B * M * in_feat * x_bytes
                      + B * out_feat * in_feat * x_bytes
                      + (B * out_feat * 4 if has_bias else 0)
                      + B * M * out_feat * x_bytes)

    out = pl.pallas_call(
        _make_kernel(has_bias, k_tiled),
        out_shape=jax.ShapeDtypeStruct((B, M, out_feat), x.dtype),
        grid_spec=grid_spec,
        compiler_params=pltpu.CompilerParams(
            dimension_semantics=("parallel", "parallel", "parallel", "arbitrary"),
            vmem_limit_bytes=vmem_limit,
        ),
        cost_estimate=pl.CostEstimate(
            flops=flops, transcendentals=0, bytes_accessed=bytes_accessed),
    )(*inputs)

    return out.reshape((B,) + middle + (out_feat,))


# ------------------------------ reference & init ------------------------------

def init_params(key, batch_size, in_feat, out_feat):
    """Mirror the module init: kaiming_uniform(a=sqrt(5)) -> U(+-1/sqrt(fan_in));
    bias -> U(+-1/fan_in)."""
    kw, kb = jax.random.split(key)
    wb = 1.0 / math.sqrt(in_feat)
    w = jax.random.uniform(kw, (batch_size, out_feat, in_feat), jnp.float32, -wb, wb)
    bb = 1.0 / in_feat
    b = jax.random.uniform(kb, (batch_size, out_feat), jnp.float32, -bb, bb)
    return w, b


def bsl_reference(x, weight, bias=None):
    y = jnp.einsum("b...i,boi->b...o",
                   x.astype(jnp.float32), weight.astype(jnp.float32),
                   precision=lax.Precision.HIGHEST)
    if bias is not None:
        bshape = (bias.shape[0],) + (1,) * (x.ndim - 2) + (bias.shape[1],)
        y = y + bias.astype(jnp.float32).reshape(bshape)
    return y


if __name__ == "__main__":
    key = jax.random.PRNGKey(0)

    # --- Case 1: module-like shapes (B=2, spatial 4x16, in=16, out=32), f32 ---
    B, in_feat, out_feat = 2, 16, 32
    spatial = (4, 16)
    k1, k2, key = jax.random.split(key, 3)
    x = jax.random.normal(k1, (B,) + spatial + (in_feat,), jnp.float32)
    weight, bias = init_params(k2, B, in_feat, out_feat)
    ref = bsl_reference(x, weight, bias)

    out = jax.block_until_ready(batch_separated_linear(x, weight, bias))
    assert out.shape == (B,) + spatial + (out_feat,)
    assert jnp.allclose(out, ref, atol=1e-3, rtol=1e-3), "case1 f32 mismatch"

    # --- Case 2: no-bias variant + bf16 I/O (f32 accumulation inside) ---------
    out_nb = jax.block_until_ready(batch_separated_linear(x, weight, None))
    assert jnp.allclose(out_nb, bsl_reference(x, weight, None),
                        atol=1e-3, rtol=1e-3), "case2 no-bias mismatch"
    out_bf = jax.block_until_ready(batch_separated_linear(
        x.astype(jnp.bfloat16), weight.astype(jnp.bfloat16), bias))
    assert out_bf.dtype == jnp.bfloat16
    assert jnp.allclose(out_bf.astype(jnp.float32), ref,
                        atol=5e-2, rtol=5e-2), "case2 bf16 mismatch"

    # --- Case 3: M not divisible by tile_m -> masked boundary block -----------
    spatial3 = (5, 8)                       # M = 40, tile_m = 16 -> partial block
    k3, k4, key = jax.random.split(key, 3)
    x3 = jax.random.normal(k3, (B,) + spatial3 + (in_feat,), jnp.float32)
    w3, b3 = init_params(k4, B, in_feat, out_feat)
    out3 = jax.block_until_ready(batch_separated_linear(x3, w3, b3, tile_m=16))
    assert out3.shape == (B,) + spatial3 + (out_feat,)
    assert jnp.allclose(out3, bsl_reference(x3, w3, b3),
                        atol=1e-3, rtol=1e-3), "case3 masked-M mismatch"

    # --- Case 4: N + K grid axes with f32 accumulator (in=out=256, tiles 128) -
    k5, k6, key = jax.random.split(key, 3)
    x4 = jax.random.normal(k5, (B, 32, 256), jnp.float32)
    w4, b4 = init_params(k6, B, 256, 256)
    out4 = jax.block_until_ready(
        batch_separated_linear(x4, w4, b4, tile_n=128, tile_k=128))
    assert out4.shape == (B, 32, 256)
    assert jnp.allclose(out4, bsl_reference(x4, w4, b4),
                        atol=1e-2, rtol=1e-2), "case4 K/N-tiled mismatch"

    print("KERNEL_OK")
</pallas_src>

<mosaic_0001>
module attributes {stable_mosaic.version = 11 : i64} {
  func.func @kernel(%arg0: i32, %arg1: i32, %arg2: i32, %arg3: i32, %arg4: memref<1x64x16xf32, #tpu.memory_space<vmem>>, %arg5: memref<1x32x16xf32, #tpu.memory_space<vmem>>, %arg6: memref<1x1x32xf32, #tpu.memory_space<vmem>>, %arg7: memref<1x64x32xf32, #tpu.memory_space<vmem>>) attributes {dimension_semantics = [#tpu.dimension_semantics<parallel>, #tpu.dimension_semantics<parallel>, #tpu.dimension_semantics<parallel>, #tpu.dimension_semantics<arbitrary>], iteration_bounds = array<i64: 2, 1, 1, 1>, scalar_prefetch = 0 : i64, scratch_operands = 0 : i64, tpu.core_type = #tpu.core_type<tc>, window_params = [{transform_indices = @transform_0, window_bounds = array<i64: 1, 64, 16>}, {transform_indices = @transform_1, window_bounds = array<i64: 1, 32, 16>}, {transform_indices = @transform_2, window_bounds = array<i64: 1, 1, 32>}, {transform_indices = @transform_3, window_bounds = array<i64: 1, 64, 32>}]} {
    %c0 = arith.constant 0 : index
    %c0_0 = arith.constant 0 : index
    %c0_1 = arith.constant 0 : index
    %0 = vector.load %arg4[%c0, %c0_0, %c0_1] : memref<1x64x16xf32, #tpu.memory_space<vmem>>, vector<1x64x16xf32>
    %1 = vector.shape_cast %0 : vector<1x64x16xf32> to vector<64x16xf32>
    %c0_2 = arith.constant 0 : index
    %c0_3 = arith.constant 0 : index
    %c0_4 = arith.constant 0 : index
    %2 = vector.load %arg5[%c0_2, %c0_3, %c0_4] : memref<1x32x16xf32, #tpu.memory_space<vmem>>, vector<1x32x16xf32>
    %3 = vector.shape_cast %2 : vector<1x32x16xf32> to vector<32x16xf32>
    %cst = arith.constant dense<0.000000e+00> : vector<64x32xf32>
    %4 = tpu.matmul %1, %3, %cst {dimension_numbers = #tpu.dot_dimension_numbers<[1], [1], [0], [0], [0, 0, 1, 0], [], []>} : vector<64x16xf32>, vector<32x16xf32>, vector<64x32xf32> -> vector<64x32xf32>
    %c0_5 = arith.constant 0 : index
    %c0_6 = arith.constant 0 : index
    %c0_7 = arith.constant 0 : index
    %5 = vector.load %arg6[%c0_5, %c0_6, %c0_7] : memref<1x1x32xf32, #tpu.memory_space<vmem>>, vector<1x1x32xf32>
    %6 = vector.shape_cast %5 : vector<1x1x32xf32> to vector<1x32xf32>
    %7 = vector.broadcast %6 : vector<1x32xf32> to vector<64x32xf32>
    %8 = arith.addf %4, %7 : vector<64x32xf32>
    %c0_8 = arith.constant 0 : index
    %c0_9 = arith.constant 0 : index
    %c0_10 = arith.constant 0 : index
    %9 = vector.load %arg7[%c0_8, %c0_9, %c0_10] : memref<1x64x32xf32, #tpu.memory_space<vmem>>, vector<1x64x32xf32>
    %10 = vector.shape_cast %9 : vector<1x64x32xf32> to vector<64x32xf32>
    %11 = vector.shape_cast %8 : vector<64x32xf32> to vector<1x64x32xf32>
    tpu.vector_store %arg7[%c0_8, %c0_9, %c0_10], %11 {strides = array<i32>} : memref<1x64x32xf32, #tpu.memory_space<vmem>>, vector<1x64x32xf32>,
    return
  }
  func.func @transform_0(%arg0: i32, %arg1: i32, %arg2: i32, %arg3: i32) -> (i32, i32, i32) {
    %c0_i32 = arith.constant 0 : i32
    return %arg0, %arg1, %arg3 : i32, i32, i32
  }
  func.func @transform_1(%arg0: i32, %arg1: i32, %arg2: i32, %arg3: i32) -> (i32, i32, i32) {
    %c0_i32 = arith.constant 0 : i32
    return %arg0, %arg2, %arg3 : i32, i32, i32
  }
  func.func @transform_2(%arg0: i32, %arg1: i32, %arg2: i32, %arg3: i32) -> (i32, i32, i32) {
    %c0_i32 = arith.constant 0 : i32
    %c0_i32_0 = arith.constant 0 : i32
    return %arg0, %c0_i32, %arg2 : i32, i32, i32
  }
  func.func @transform_3(%arg0: i32, %arg1: i32, %arg2: i32, %arg3: i32) -> (i32, i32, i32) {
    %c0_i32 = arith.constant 0 : i32
    return %arg0, %arg1, %arg2 : i32, i32, i32
  }
}

</mosaic_0001>

<bundles_post_ra>
// kernel: tpu_custom_call.1
= control target key start
LH: loop header
LB: loop body
LE: loop exit
PB: predicated region body
PF: predicated region fallthrough
CT: control target
= control target key end

     0   :  { %s769_s12 = smov 0   ;;  %s771_s13 = smov 0   ;;  %s855_s0 = inlined_call_operand.vmem [shape: f32[2,64,16], index: 0, kind: input, shape index: {}]   ;;  %s856_s1 = inlined_call_operand.vmem [shape: f32[2,32,16], index: 1, kind: input, shape index: {}]   ;;  %s857_s2 = inlined_call_operand.vmem [shape: f32[2,1,32], index: 2, kind: input, shape index: {}]   ;;  %s858_s3 = inlined_call_operand.vmem [shape: f32[2,64,32], index: 3, kind: output, shape index: {}]  }
   0x1   :  { %s773_s14 = smov 0  }
   0x2 LB: > { %s39_s15 = sadd.s32 1, %s743_s13  ;;  %p628_p0 = scmp.ge.s32.totalorder %s747_s14, 1  ;;  %s747_s14 = sphi %s773_s14, %s13_s14   ;;  %s743_s13 = sphi %s771_s13, %s862_s13   ;;  %s739_s12 = sphi %s769_s12, %s861_s12  }
   0x3   : > { %p41_p1 = scmp.ge.s32.totalorder %s39_s15, 2  ;;  %p214_p2 = scmp.lt.s32.totalorder %s747_s14, 3 }
   0x5   : > { %s864_s15 = smov (%p41_p1, %s39_s15), 0  ;;  %p215_p3 = pnand %p628_p0, %p214_p2 }
   0x6   : > { %p271_p4 = scmp.lt.s32.totalorder (!%p215_p3), %s739_s12, 1  ;;  %vm334_vm0 = vcmask (!%p215_p3), 130048   ;;  %vm476_vm2 = vcmask (!%p215_p3), 261120  }
   0x7   : > { %218 = sbr.rel (%p215_p3) target bundleno = 257 (0x101), region = 32  ;;  %vm796_vm1 = vmpackc.low (!%p215_p3), %vm334_vm0, %vm334_vm0 }
   0xe   : > { %s866_s12 = smov (!%p271_p4, %s739_s12), 1 }
   0xf   : > { %s651_s16 = sshll.u32 %s866_s12, 5  ;;  %s650_s17 = sshll.u32 %s866_s12, 6 }
  0x10   : > { %s294_s20 = scalar_lea.vmem %s856_s1, %s651_s16  ;;  %s281_s23 = scalar_lea.vmem %s855_s0, %s650_s17 }
  0x11   : > { %v323_v1 = vld [vmem:[%s294_s20] sm:$0xff]  ;;  %v324_v2 = vld [vmem:[%s294_s20 + $0x8] sm:$0xff]  ;;  %v325_v3 = vld [vmem:[%s294_s20 + $0x10] sm:$0xff]  ;;  %s301_s26 = scalar_lea.vmem %s857_s2, %s866_s12  ;;  %s313_s29 = scalar_lea.vmem %s858_s3, %s650_s17 }
  0x12   : > { %v685_v4 = vpack.c.bf16 %v324_v2, %v323_v1  ;;  %v326_v5 = vld [vmem:[%s294_s20 + $0x18] sm:$0xff]  ;;  %v315_v6 = vld [vmem:[%s281_s23] sm:$0xff]  ;;  %v316_v9 = vld [vmem:[%s281_s23 + $0x8] sm:$0xff] }
  0x13   : > { %v319_v7 = vld [vmem:[%s281_s23 + $0x20] sm:$0xff]  ;;  %v691_v8 = vpack.c.bf16 %v326_v5, %v325_v3  ;;  %673 = vmatprep.mubr.msk.f32.mxu0 %vm334_vm0, %v315_v6  ;;  %v320_v10 = vld [vmem:[%s281_s23 + $0x28] sm:$0xff]  ;;  %v317_v11 = vld [vmem:[%s281_s23 + $0x10] sm:$0xff] }
  0x14   : > { %679 = vmatprep.mubr.msk.f32.mxu1 %vm334_vm0, %v319_v7  ;;  %687 = vmatprep.subr.msk.bf16.mxu0 %vm796_vm1, %v685_v4  ;;  %v321_v12 = vld [vmem:[%s281_s23 + $0x30] sm:$0xff]  ;;  %v318_v13 = vld [vmem:[%s281_s23 + $0x18] sm:$0xff]  ;;  %v635_v15 = vld [vmem:[%s301_s26] ss:$0 sm:$0xff] }
  0x15   : > { %697 = vmatprep.subr.msk.bf16.mxu1 %vm796_vm1, %v685_v4  ;;  %690 = vmatpush3.bf16.xpose.msk.msra.mxu0 %vm796_vm1, %v685_v4  ;;  %v322_v14 = vld [vmem:[%s281_s23 + $0x38] sm:$0xff] }
  0x16   : > { %699 = vmatpush3.bf16.xpose.msk.msra.mxu1 %vm796_vm1, %v685_v4  ;;  %693 = vmatprep.subr.msk.bf16.mxu0 %vm796_vm1, %v691_v8 }
  0x17   : > { %698 = vmatprep.subr.msk.bf16.mxu1 %vm796_vm1, %v691_v8 }
  0x1d   : > { %696 = vmatpush3.bf16.xpose.msk.msra.mxu0 %vm796_vm1, %v691_v8 }
  0x1e   : > { %700 = vmatpush3.bf16.xpose.msk.msra.mxu1 %vm796_vm1, %v691_v8 }
  0x24   : > { %674 = vmatmul.mubr.msk.f32.vlgmr.msra.gmra.mrb[0].mxu0 %vm334_vm0, %v316_v9 }
  0x25   : > { %680 = vmatmul.mubr.msk.f32.vlgmr.msra.gmra.mrb[0].mxu1 %vm334_vm0, %v320_v10  ;;  %676 = vmatprep.mubr.msk.f32.mxu0 %vm334_vm0, %v317_v11 }
  0x26   : > { %682 = vmatprep.mubr.msk.f32.mxu1 %vm334_vm0, %v321_v12 }
  0x28   : > { %677 = vmatmul.mubr.msk.f32.gmra.mrb[2].mxu0 %vm334_vm0, %v318_v13 }
  0x29   : > { %683 = vmatmul.mubr.msk.f32.gmra.mrb[2].mxu1 %vm334_vm0, %v322_v14 }
  0xf7   : > { %v675_v16 = vpop.f32.mrb[0].mxu0 }
  0xf8   : > { %v681_v17 = vpop.f32.mrb[0].mxu1  ;;  %v443_v18 = vadd.f32 %v675_v16, %v635_v15  ;;  %v437_v20 = vpop.f32.mrb[1].mxu0 }
  0xf9   : > { %v463_v19 = vadd.f32 %v681_v17, %v635_v15  ;;  %v457_v21 = vpop.f32.mrb[1].mxu1  ;;  %v438_v22 = vadd.f32 %v635_v15, %v437_v20 }
  0xfa   : > { %v458_v23 = vadd.f32 %v635_v15, %v457_v21  ;;  %478 = vst.msk [vmem:[%s313_s29 + $0x8] sm:$0xff] %vm476_vm2, %v443_v18 }
  0xfb   : > { %482 = vst.msk [vmem:[%s313_s29 + $0x28] sm:$0xff] %vm476_vm2, %v463_v19  ;;  %477 = vst.msk [vmem:[%s313_s29] sm:$0xff] %vm476_vm2, %v438_v22  ;;  %v678_v24 = vpop.f32.mrb[2].mxu0 }
  0xfc   : > { %481 = vst.msk [vmem:[%s313_s29 + $0x20] sm:$0xff] %vm476_vm2, %v458_v23  ;;  %v684_v25 = vpop.f32.mrb[2].mxu1  ;;  %v453_v26 = vadd.f32 %v678_v24, %v635_v15  ;;  %v447_v28 = vpop.f32.mrb[3].mxu0 }
  0xfd   : > { %v473_v27 = vadd.f32 %v684_v25, %v635_v15  ;;  %v467_v29 = vpop.f32.mrb[3].mxu1  ;;  %v448_v30 = vadd.f32 %v635_v15, %v447_v28 }
  0xfe   : > { %v468_v31 = vadd.f32 %v635_v15, %v467_v29  ;;  %480 = vst.msk [vmem:[%s313_s29 + $0x18] sm:$0xff] %vm476_vm2, %v453_v26 }
  0xff   : > { %484 = vst.msk [vmem:[%s313_s29 + $0x38] sm:$0xff] %vm476_vm2, %v473_v27  ;;  %479 = vst.msk [vmem:[%s313_s29 + $0x10] sm:$0xff] %vm476_vm2, %v448_v30 }
 0x100   : > { %483 = vst.msk [vmem:[%s313_s29 + $0x30] sm:$0xff] %vm476_vm2, %v468_v31 }
 0x101 PF: > { %s13_s14 = sadd.s32 1, %s747_s14   ;;  %s861_s12 = smov %s743_s13 }
 0x102   : > { %p10_p5 = scmp.ge.s32.totalorder %s13_s14, 4   ;;  %s862_s13 = smov %s864_s15 }
 0x104   :  { %12 = sbr.rel (!%p10_p5) target bundleno = 2 (0x2), region = 68 }

</bundles_post_ra>
